<compile_context>
chip_gen: v7x
topology: tpu7x:2x2x1
jax: 0.10.0
libtpu: 0.0.40
codegen_flags: <defaults>
</compile_context>

<pallas_src>
import functools

import jax
import jax.numpy as jnp
from jax import lax
from jax.experimental import pallas as pl
from jax.experimental.pallas import tpu as pltpu

HIDDEN = 64
LIN1 = 64
LEAK = 0.01  # PyTorch LeakyReLU default negative_slope


def _round_up(n, m):
    return -(-n // m) * m


def _lstm_mlp_kernel(x_ref, hc0_ref, lstm_ref, mlp_ref, y_ref, hc_ref, xg_scr):
    TB, I = x_ref.shape
    B = hc0_ref.shape[0]
    H = hc0_ref.shape[1] // 2
    T = TB // B
    O = y_ref.shape[1]
    L = mlp_ref.shape[1]                 # LIN1
    I_pad = _round_up(I, 8)

    # ---- packed LSTM parameters (gate column order [f, i, o, g]) ---------------
    w_ih = lstm_ref[0:I, :]                               # (I, 4H)
    w_hh = lstm_ref[I_pad:I_pad + H, :]                   # (H, 4H)
    b_l  = lstm_ref[I_pad + H:I_pad + H + 1, :]           # (1, 4H)  (b_ih + b_hh folded)

    # Non-recurrent input projection for all T steps at once, staged through VMEM
    # scratch so it doesn't stay live as a 16-vreg value across the unrolled loop.
    xg_scr[...] = (
        jnp.dot(x_ref[...], w_ih, preferred_element_type=jnp.float32) + b_l)

    h = hc0_ref[:, 0:H]                  # (B, H)
    c = hc0_ref[:, H:2 * H]              # (B, H)

    # Serial recurrence, fully unrolled with static indices.  Only h @ w_hh and the
    # gate nonlinearities sit on the serial path; per-step h stays in vregs.
    hs_list = []
    for t in range(T):
        gates = xg_scr[t * B:(t + 1) * B, :] + jnp.dot(
            h, w_hh, preferred_element_type=jnp.float32)  # (B, 4H) order [f, i, o, g]
        sig = jax.nn.sigmoid(gates[:, 0:3 * H])           # f, i, o in one EUP region
        f_g = sig[:, 0 * H:1 * H]
        i_g = sig[:, 1 * H:2 * H]
        o_g = sig[:, 2 * H:3 * H]
        g_g = jnp.tanh(gates[:, 3 * H:4 * H])
        c = f_g * c + i_g * g_g
        h = o_g * jnp.tanh(c)
        hs_list.append(h)

    # Final (h, c) written once as a single lane-dense (B, 2H) store.
    hc_ref[...] = jnp.concatenate([h, c], axis=1)

    # MLP hoisted out of the recurrence: one batched pass on the stacked states.
    hs = jnp.concatenate(hs_list, axis=0)                 # (T*B, H), pure layout stack

    # ---- packed MLP parameters --------------------------------------------------
    w1 = mlp_ref[0:H, :]                                  # (H, L)
    b1 = mlp_ref[H:H + 1, :]                              # (1, L)
    w2 = mlp_ref[H + 8:H + 8 + L, 0:O]                    # (L, O)
    b2 = mlp_ref[H + 8 + L:H + 8 + L + 1, 0:O]            # (1, O)

    y1 = jnp.maximum(
        jnp.dot(hs, w1, preferred_element_type=jnp.float32) + b1, 0.0)   # ReLU
    z = jnp.dot(y1, w2, preferred_element_type=jnp.float32) + b2
    y_ref[...] = jnp.where(z > 0.0, z, LEAK * z)          # LeakyReLU


@functools.partial(jax.jit, static_argnums=(5,))
def model_forward(x, h0, c0, lstm_w, mlp_w, outputs):
    T, B, I = x.shape
    H = HIDDEN
    O = outputs

    hc0 = jnp.concatenate([h0[0], c0[0]], axis=1)         # (B, 2H) packed state input
    vmem = pl.BlockSpec(memory_space=pltpu.MemorySpace.VMEM)

    y2d, hc = pl.pallas_call(
        _lstm_mlp_kernel,
        out_shape=(
            jax.ShapeDtypeStruct((T * B, O), jnp.float32),
            jax.ShapeDtypeStruct((B, 2 * H), jnp.float32),
        ),
        in_specs=[vmem, vmem, vmem, vmem],
        out_specs=(vmem, vmem),
        scratch_shapes=[pltpu.VMEM((T * B, 4 * H), jnp.float32)],   # staged x @ W_ih^T
    )(x.reshape(T * B, I), hc0, lstm_w, mlp_w)

    h_f = hc[:, :H]
    c_f = hc[:, H:]
    return y2d.reshape(T, B, O), (h_f[None], c_f[None])


def _reorder_gates(w):
    """Permute 4H gate columns from torch order [i, f, g, o] to kernel order [f, i, o, g]."""
    i, f, g, o = jnp.split(w, 4, axis=-1)
    return jnp.concatenate([f, i, o, g], axis=-1)


def pack_params(params, inputs, outputs):
    """One-time packing: 2 dense parameter blocks, gate columns reordered, biases folded."""
    H = HIDDEN
    L = LIN1
    assert outputs <= L
    I_pad = _round_up(inputs, 8)

    w_ih = _reorder_gates(params["w_ih_T"])                      # (I, 4H)
    w_hh = _reorder_gates(params["w_hh_T"])                      # (H, 4H)
    b_l = _reorder_gates(params["b_ih"] + params["b_hh"])        # (1, 4H)

    lstm_w = jnp.zeros((I_pad + H + 8, 4 * H), jnp.float32)
    lstm_w = lstm_w.at[0:inputs, :].set(w_ih)
    lstm_w = lstm_w.at[I_pad:I_pad + H, :].set(w_hh)
    lstm_w = lstm_w.at[I_pad + H:I_pad + H + 1, :].set(b_l)

    mlp_w = jnp.zeros((H + 8 + L + 8, L), jnp.float32)
    mlp_w = mlp_w.at[0:H, :].set(params["w1_T"])
    mlp_w = mlp_w.at[H:H + 1, :].set(params["b1"])
    mlp_w = mlp_w.at[H + 8:H + 8 + L, 0:outputs].set(params["w2_T"])
    mlp_w = mlp_w.at[H + 8 + L:H + 8 + L + 1, 0:outputs].set(params["b2"])

    return {"lstm_w": lstm_w, "mlp_w": mlp_w}


def reference_forward(x, h0, c0, params):
    """Pure-JAX reference matching torch.nn.LSTM + Linear/ReLU + Linear/LeakyReLU."""
    H = HIDDEN

    def step(carry, x_t):
        h, c = carry
        gates = (x_t @ params["w_ih_T"] + h @ params["w_hh_T"]
                 + params["b_ih"] + params["b_hh"])
        i_g = jax.nn.sigmoid(gates[:, 0 * H:1 * H])
        f_g = jax.nn.sigmoid(gates[:, 1 * H:2 * H])
        g_g = jnp.tanh(gates[:, 2 * H:3 * H])
        o_g = jax.nn.sigmoid(gates[:, 3 * H:4 * H])
        c_new = f_g * c + i_g * g_g
        h_new = o_g * jnp.tanh(c_new)
        return (h_new, c_new), h_new

    (h_f, c_f), hs = lax.scan(step, (h0[0], c0[0]), x)
    y1 = jnp.maximum(hs @ params["w1_T"] + params["b1"], 0.0)
    z = y1 @ params["w2_T"] + params["b2"]
    y = jnp.where(z > 0, z, LEAK * z)
    return y, (h_f[None], c_f[None])


def make_params(key, inputs, outputs):
    H = HIDDEN
    ks = jax.random.split(key, 8)
    scale = 1.0 / jnp.sqrt(H)
    u = lambda k, shape: jax.random.uniform(k, shape, jnp.float32, -scale, scale)
    return {
        # stored pre-transposed so the kernel does x @ W^T directly
        "w_ih_T": u(ks[0], (inputs, 4 * H)),
        "w_hh_T": u(ks[1], (H, 4 * H)),
        "b_ih":   u(ks[2], (1, 4 * H)),
        "b_hh":   u(ks[3], (1, 4 * H)),
        "w1_T":   u(ks[4], (H, LIN1)),
        "b1":     u(ks[5], (1, LIN1)),
        "w2_T":   u(ks[6], (LIN1, outputs)),
        "b2":     u(ks[7], (1, outputs)),
    }


if __name__ == "__main__":
    INPUTS, OUTPUTS = 32, 8
    T, B = 8, 8

    key = jax.random.PRNGKey(0)
    k_param, k_x = jax.random.split(key)
    params = make_params(k_param, INPUTS, OUTPUTS)
    packed = pack_params(params, INPUTS, OUTPUTS)     # one-time parameter packing

    x = jax.random.normal(k_x, (T, B, INPUTS), jnp.float32)
    h0 = jnp.zeros((1, B, HIDDEN), jnp.float32)       # Model.initial_hidden
    c0 = jnp.zeros((1, B, HIDDEN), jnp.float32)

    y, (h_out, c_out) = model_forward(x, h0, c0,
                                      packed["lstm_w"], packed["mlp_w"], OUTPUTS)
    jax.block_until_ready((y, h_out, c_out))

    y_ref, (h_ref, c_ref) = reference_forward(x, h0, c0, params)
    assert jnp.allclose(y, y_ref, atol=1e-4, rtol=1e-4), "output mismatch"
    assert jnp.allclose(h_out, h_ref, atol=1e-4, rtol=1e-4), "h mismatch"
    assert jnp.allclose(c_out, c_ref, atol=1e-4, rtol=1e-4), "c mismatch"

    print("KERNEL_OK")
</pallas_src>

<mosaic_0001>
module attributes {stable_mosaic.version = 11 : i64} {
  func.func @_lstm_mlp_kernel(%arg0: memref<64x32xf32, #tpu.memory_space<vmem>>, %arg1: memref<8x128xf32, #tpu.memory_space<vmem>>, %arg2: memref<104x256xf32, #tpu.memory_space<vmem>>, %arg3: memref<144x64xf32, #tpu.memory_space<vmem>>, %arg4: memref<64x8xf32, #tpu.memory_space<vmem>>, %arg5: memref<8x128xf32, #tpu.memory_space<vmem>>, %arg6: memref<64x256xf32, #tpu.memory_space<vmem>>) attributes {dimension_semantics = [], scalar_prefetch = 0 : i64, scratch_operands = 1 : i64, tpu.core_type = #tpu.core_type<tc>} {
    %c0 = arith.constant 0 : index
    %c0_0 = arith.constant 0 : index
    %0 = vector.load %arg2[%c0, %c0_0] : memref<104x256xf32, #tpu.memory_space<vmem>>, vector<32x256xf32>
    %c32 = arith.constant 32 : index
    %c0_1 = arith.constant 0 : index
    %1 = vector.load %arg2[%c32, %c0_1] : memref<104x256xf32, #tpu.memory_space<vmem>>, vector<64x256xf32>
    %c96 = arith.constant 96 : index
    %c0_2 = arith.constant 0 : index
    %2 = vector.load %arg2[%c96, %c0_2] : memref<104x256xf32, #tpu.memory_space<vmem>>, vector<1x256xf32>
    %c0_3 = arith.constant 0 : index
    %c0_4 = arith.constant 0 : index
    %3 = vector.load %arg0[%c0_3, %c0_4] : memref<64x32xf32, #tpu.memory_space<vmem>>, vector<64x32xf32>
    %cst = arith.constant dense<0.000000e+00> : vector<64x256xf32>
    %4 = tpu.matmul %3, %0, %cst {dimension_numbers = #tpu.dot_dimension_numbers<[1], [0], [0], [1], [0, 0, 1, 1], [], []>} : vector<64x32xf32>, vector<32x256xf32>, vector<64x256xf32> -> vector<64x256xf32>
    %5 = vector.broadcast %2 : vector<1x256xf32> to vector<64x256xf32>
    %6 = arith.addf %4, %5 : vector<64x256xf32>
    %c0_5 = arith.constant 0 : index
    %c0_6 = arith.constant 0 : index
    %7 = vector.load %arg6[%c0_5, %c0_6] : memref<64x256xf32, #tpu.memory_space<vmem>>, vector<64x256xf32>
    tpu.vector_store %arg6[%c0_5, %c0_6], %6 {strides = array<i32>} : memref<64x256xf32, #tpu.memory_space<vmem>>, vector<64x256xf32>,
    %c0_7 = arith.constant 0 : index
    %c0_8 = arith.constant 0 : index
    %8 = vector.load %arg1[%c0_7, %c0_8] : memref<8x128xf32, #tpu.memory_space<vmem>>, vector<8x64xf32>
    %c0_9 = arith.constant 0 : index
    %c64 = arith.constant 64 : index
    %9 = vector.load %arg1[%c0_9, %c64] : memref<8x128xf32, #tpu.memory_space<vmem>>, vector<8x64xf32>
    %c0_10 = arith.constant 0 : index
    %c0_11 = arith.constant 0 : index
    %10 = vector.load %arg6[%c0_10, %c0_11] : memref<64x256xf32, #tpu.memory_space<vmem>>, vector<8x256xf32>
    %cst_12 = arith.constant dense<0.000000e+00> : vector<8x256xf32>
    %11 = tpu.matmul %8, %1, %cst_12 {dimension_numbers = #tpu.dot_dimension_numbers<[1], [0], [0], [1], [0, 0, 1, 1], [], []>} : vector<8x64xf32>, vector<64x256xf32>, vector<8x256xf32> -> vector<8x256xf32>
    %12 = arith.addf %10, %11 : vector<8x256xf32>
    %13 = vector.extract_strided_slice %12 {offsets = [0, 0], sizes = [8, 192], strides = [1, 1]} : vector<8x256xf32> to vector<8x192xf32>
    %14 = arith.negf %13 : vector<8x192xf32>
    %15 = math.exp %14 : vector<8x192xf32>
    %cst_13 = arith.constant 1.000000e+00 : f32
    %16 = vector.broadcast %cst_13 : f32 to vector<8x192xf32>
    %17 = arith.addf %16, %15 : vector<8x192xf32>
    %18 = arith.divf %16, %17 : vector<8x192xf32>
    %19 = vector.extract_strided_slice %18 {offsets = [0, 0], sizes = [8, 64], strides = [1, 1]} : vector<8x192xf32> to vector<8x64xf32>
    %20 = vector.extract_strided_slice %18 {offsets = [0, 64], sizes = [8, 64], strides = [1, 1]} : vector<8x192xf32> to vector<8x64xf32>
    %21 = vector.extract_strided_slice %18 {offsets = [0, 128], sizes = [8, 64], strides = [1, 1]} : vector<8x192xf32> to vector<8x64xf32>
    %22 = vector.extract_strided_slice %12 {offsets = [0, 192], sizes = [8, 64], strides = [1, 1]} : vector<8x256xf32> to vector<8x64xf32>
    %23 = math.tanh %22 : vector<8x64xf32>
    %24 = arith.mulf %19, %9 : vector<8x64xf32>
    %25 = arith.mulf %20, %23 : vector<8x64xf32>
    %26 = arith.addf %24, %25 : vector<8x64xf32>
    %27 = math.tanh %26 : vector<8x64xf32>
    %28 = arith.mulf %21, %27 : vector<8x64xf32>
    %c8 = arith.constant 8 : index
    %c0_14 = arith.constant 0 : index
    %29 = vector.load %arg6[%c8, %c0_14] : memref<64x256xf32, #tpu.memory_space<vmem>>, vector<8x256xf32>
    %cst_15 = arith.constant dense<0.000000e+00> : vector<8x256xf32>
    %30 = tpu.matmul %28, %1, %cst_15 {dimension_numbers = #tpu.dot_dimension_numbers<[1], [0], [0], [1], [0, 0, 1, 1], [], []>} : vector<8x64xf32>, vector<64x256xf32>, vector<8x256xf32> -> vector<8x256xf32>
    %31 = arith.addf %29, %30 : vector<8x256xf32>
    %32 = vector.extract_strided_slice %31 {offsets = [0, 0], sizes = [8, 192], strides = [1, 1]} : vector<8x256xf32> to vector<8x192xf32>
    %33 = arith.negf %32 : vector<8x192xf32>
    %34 = math.exp %33 : vector<8x192xf32>
    %cst_16 = arith.constant 1.000000e+00 : f32
    %35 = vector.broadcast %cst_16 : f32 to vector<8x192xf32>
    %36 = arith.addf %35, %34 : vector<8x192xf32>
    %37 = arith.divf %35, %36 : vector<8x192xf32>
    %38 = vector.extract_strided_slice %37 {offsets = [0, 0], sizes = [8, 64], strides = [1, 1]} : vector<8x192xf32> to vector<8x64xf32>
    %39 = vector.extract_strided_slice %37 {offsets = [0, 64], sizes = [8, 64], strides = [1, 1]} : vector<8x192xf32> to vector<8x64xf32>
    %40 = vector.extract_strided_slice %37 {offsets = [0, 128], sizes = [8, 64], strides = [1, 1]} : vector<8x192xf32> to vector<8x64xf32>
    %41 = vector.extract_strided_slice %31 {offsets = [0, 192], sizes = [8, 64], strides = [1, 1]} : vector<8x256xf32> to vector<8x64xf32>
    %42 = math.tanh %41 : vector<8x64xf32>
    %43 = arith.mulf %38, %26 : vector<8x64xf32>
    %44 = arith.mulf %39, %42 : vector<8x64xf32>
    %45 = arith.addf %43, %44 : vector<8x64xf32>
    %46 = math.tanh %45 : vector<8x64xf32>
    %47 = arith.mulf %40, %46 : vector<8x64xf32>
    %c16 = arith.constant 16 : index
    %c0_17 = arith.constant 0 : index
    %48 = vector.load %arg6[%c16, %c0_17] : memref<64x256xf32, #tpu.memory_space<vmem>>, vector<8x256xf32>
    %cst_18 = arith.constant dense<0.000000e+00> : vector<8x256xf32>
    %49 = tpu.matmul %47, %1, %cst_18 {dimension_numbers = #tpu.dot_dimension_numbers<[1], [0], [0], [1], [0, 0, 1, 1], [], []>} : vector<8x64xf32>, vector<64x256xf32>, vector<8x256xf32> -> vector<8x256xf32>
    %50 = arith.addf %48, %49 : vector<8x256xf32>
    %51 = vector.extract_strided_slice %50 {offsets = [0, 0], sizes = [8, 192], strides = [1, 1]} : vector<8x256xf32> to vector<8x192xf32>
    %52 = arith.negf %51 : vector<8x192xf32>
    %53 = math.exp %52 : vector<8x192xf32>
    %cst_19 = arith.constant 1.000000e+00 : f32
    %54 = vector.broadcast %cst_19 : f32 to vector<8x192xf32>
    %55 = arith.addf %54, %53 : vector<8x192xf32>
    %56 = arith.divf %54, %55 : vector<8x192xf32>
    %57 = vector.extract_strided_slice %56 {offsets = [0, 0], sizes = [8, 64], strides = [1, 1]} : vector<8x192xf32> to vector<8x64xf32>
    %58 = vector.extract_strided_slice %56 {offsets = [0, 64], sizes = [8, 64], strides = [1, 1]} : vector<8x192xf32> to vector<8x64xf32>
    %59 = vector.extract_strided_slice %56 {offsets = [0, 128], sizes = [8, 64], strides = [1, 1]} : vector<8x192xf32> to vector<8x64xf32>
    %60 = vector.extract_strided_slice %50 {offsets = [0, 192], sizes = [8, 64], strides = [1, 1]} : vector<8x256xf32> to vector<8x64xf32>
    %61 = math.tanh %60 : vector<8x64xf32>
    %62 = arith.mulf %57, %45 : vector<8x64xf32>
    %63 = arith.mulf %58, %61 : vector<8x64xf32>
    %64 = arith.addf %62, %63 : vector<8x64xf32>
    %65 = math.tanh %64 : vector<8x64xf32>
    %66 = arith.mulf %59, %65 : vector<8x64xf32>
    %c24 = arith.constant 24 : index
    %c0_20 = arith.constant 0 : index
    %67 = vector.load %arg6[%c24, %c0_20] : memref<64x256xf32, #tpu.memory_space<vmem>>, vector<8x256xf32>
    %cst_21 = arith.constant dense<0.000000e+00> : vector<8x256xf32>
    %68 = tpu.matmul %66, %1, %cst_21 {dimension_numbers = #tpu.dot_dimension_numbers<[1], [0], [0], [1], [0, 0, 1, 1], [], []>} : vector<8x64xf32>, vector<64x256xf32>, vector<8x256xf32> -> vector<8x256xf32>
    %69 = arith.addf %67, %68 : vector<8x256xf32>
    %70 = vector.extract_strided_slice %69 {offsets = [0, 0], sizes = [8, 192], strides = [1, 1]} : vector<8x256xf32> to vector<8x192xf32>
    %71 = arith.negf %70 : vector<8x192xf32>
    %72 = math.exp %71 : vector<8x192xf32>
    %cst_22 = arith.constant 1.000000e+00 : f32
    %73 = vector.broadcast %cst_22 : f32 to vector<8x192xf32>
    %74 = arith.addf %73, %72 : vector<8x192xf32>
    %75 = arith.divf %73, %74 : vector<8x192xf32>
    %76 = vector.extract_strided_slice %75 {offsets = [0, 0], sizes = [8, 64], strides = [1, 1]} : vector<8x192xf32> to vector<8x64xf32>
    %77 = vector.extract_strided_slice %75 {offsets = [0, 64], sizes = [8, 64], strides = [1, 1]} : vector<8x192xf32> to vector<8x64xf32>
    %78 = vector.extract_strided_slice %75 {offsets = [0, 128], sizes = [8, 64], strides = [1, 1]} : vector<8x192xf32> to vector<8x64xf32>
    %79 = vector.extract_strided_slice %69 {offsets = [0, 192], sizes = [8, 64], strides = [1, 1]} : vector<8x256xf32> to vector<8x64xf32>
    %80 = math.tanh %79 : vector<8x64xf32>
    %81 = arith.mulf %76, %64 : vector<8x64xf32>
    %82 = arith.mulf %77, %80 : vector<8x64xf32>
    %83 = arith.addf %81, %82 : vector<8x64xf32>
    %84 = math.tanh %83 : vector<8x64xf32>
    %85 = arith.mulf %78, %84 : vector<8x64xf32>
    %c32_23 = arith.constant 32 : index
    %c0_24 = arith.constant 0 : index
    %86 = vector.load %arg6[%c32_23, %c0_24] : memref<64x256xf32, #tpu.memory_space<vmem>>, vector<8x256xf32>
    %cst_25 = arith.constant dense<0.000000e+00> : vector<8x256xf32>
    %87 = tpu.matmul %85, %1, %cst_25 {dimension_numbers = #tpu.dot_dimension_numbers<[1], [0], [0], [1], [0, 0, 1, 1], [], []>} : vector<8x64xf32>, vector<64x256xf32>, vector<8x256xf32> -> vector<8x256xf32>
    %88 = arith.addf %86, %87 : vector<8x256xf32>
    %89 = vector.extract_strided_slice %88 {offsets = [0, 0], sizes = [8, 192], strides = [1, 1]} : vector<8x256xf32> to vector<8x192xf32>
    %90 = arith.negf %89 : vector<8x192xf32>
    %91 = math.exp %90 : vector<8x192xf32>
    %cst_26 = arith.constant 1.000000e+00 : f32
    %92 = vector.broadcast %cst_26 : f32 to vector<8x192xf32>
    %93 = arith.addf %92, %91 : vector<8x192xf32>
    %94 = arith.divf %92, %93 : vector<8x192xf32>
    %95 = vector.extract_strided_slice %94 {offsets = [0, 0], sizes = [8, 64], strides = [1, 1]} : vector<8x192xf32> to vector<8x64xf32>
    %96 = vector.extract_strided_slice %94 {offsets = [0, 64], sizes = [8, 64], strides = [1, 1]} : vector<8x192xf32> to vector<8x64xf32>
    %97 = vector.extract_strided_slice %94 {offsets = [0, 128], sizes = [8, 64], strides = [1, 1]} : vector<8x192xf32> to vector<8x64xf32>
    %98 = vector.extract_strided_slice %88 {offsets = [0, 192], sizes = [8, 64], strides = [1, 1]} : vector<8x256xf32> to vector<8x64xf32>
    %99 = math.tanh %98 : vector<8x64xf32>
    %100 = arith.mulf %95, %83 : vector<8x64xf32>
    %101 = arith.mulf %96, %99 : vector<8x64xf32>
    %102 = arith.addf %100, %101 : vector<8x64xf32>
    %103 = math.tanh %102 : vector<8x64xf32>
    %104 = arith.mulf %97, %103 : vector<8x64xf32>
    %c40 = arith.constant 40 : index
    %c0_27 = arith.constant 0 : index
    %105 = vector.load %arg6[%c40, %c0_27] : memref<64x256xf32, #tpu.memory_space<vmem>>, vector<8x256xf32>
    %cst_28 = arith.constant dense<0.000000e+00> : vector<8x256xf32>
    %106 = tpu.matmul %104, %1, %cst_28 {dimension_numbers = #tpu.dot_dimension_numbers<[1], [0], [0], [1], [0, 0, 1, 1], [], []>} : vector<8x64xf32>, vector<64x256xf32>, vector<8x256xf32> -> vector<8x256xf32>
    %107 = arith.addf %105, %106 : vector<8x256xf32>
    %108 = vector.extract_strided_slice %107 {offsets = [0, 0], sizes = [8, 192], strides = [1, 1]} : vector<8x256xf32> to vector<8x192xf32>
    %109 = arith.negf %108 : vector<8x192xf32>
    %110 = math.exp %109 : vector<8x192xf32>
    %cst_29 = arith.constant 1.000000e+00 : f32
    %111 = vector.broadcast %cst_29 : f32 to vector<8x192xf32>
    %112 = arith.addf %111, %110 : vector<8x192xf32>
    %113 = arith.divf %111, %112 : vector<8x192xf32>
    %114 = vector.extract_strided_slice %113 {offsets = [0, 0], sizes = [8, 64], strides = [1, 1]} : vector<8x192xf32> to vector<8x64xf32>
    %115 = vector.extract_strided_slice %113 {offsets = [0, 64], sizes = [8, 64], strides = [1, 1]} : vector<8x192xf32> to vector<8x64xf32>
    %116 = vector.extract_strided_slice %113 {offsets = [0, 128], sizes = [8, 64], strides = [1, 1]} : vector<8x192xf32> to vector<8x64xf32>
    %117 = vector.extract_strided_slice %107 {offsets = [0, 192], sizes = [8, 64], strides = [1, 1]} : vector<8x256xf32> to vector<8x64xf32>
    %118 = math.tanh %117 : vector<8x64xf32>
    %119 = arith.mulf %114, %102 : vector<8x64xf32>
    %120 = arith.mulf %115, %118 : vector<8x64xf32>
    %121 = arith.addf %119, %120 : vector<8x64xf32>
    %122 = math.tanh %121 : vector<8x64xf32>
    %123 = arith.mulf %116, %122 : vector<8x64xf32>
    %c48 = arith.constant 48 : index
    %c0_30 = arith.constant 0 : index
    %124 = vector.load %arg6[%c48, %c0_30] : memref<64x256xf32, #tpu.memory_space<vmem>>, vector<8x256xf32>
    %cst_31 = arith.constant dense<0.000000e+00> : vector<8x256xf32>
    %125 = tpu.matmul %123, %1, %cst_31 {dimension_numbers = #tpu.dot_dimension_numbers<[1], [0], [0], [1], [0, 0, 1, 1], [], []>} : vector<8x64xf32>, vector<64x256xf32>, vector<8x256xf32> -> vector<8x256xf32>
    %126 = arith.addf %124, %125 : vector<8x256xf32>
    %127 = vector.extract_strided_slice %126 {offsets = [0, 0], sizes = [8, 192], strides = [1, 1]} : vector<8x256xf32> to vector<8x192xf32>
    %128 = arith.negf %127 : vector<8x192xf32>
    %129 = math.exp %128 : vector<8x192xf32>
    %cst_32 = arith.constant 1.000000e+00 : f32
    %130 = vector.broadcast %cst_32 : f32 to vector<8x192xf32>
    %131 = arith.addf %130, %129 : vector<8x192xf32>
    %132 = arith.divf %130, %131 : vector<8x192xf32>
    %133 = vector.extract_strided_slice %132 {offsets = [0, 0], sizes = [8, 64], strides = [1, 1]} : vector<8x192xf32> to vector<8x64xf32>
    %134 = vector.extract_strided_slice %132 {offsets = [0, 64], sizes = [8, 64], strides = [1, 1]} : vector<8x192xf32> to vector<8x64xf32>
    %135 = vector.extract_strided_slice %132 {offsets = [0, 128], sizes = [8, 64], strides = [1, 1]} : vector<8x192xf32> to vector<8x64xf32>
    %136 = vector.extract_strided_slice %126 {offsets = [0, 192], sizes = [8, 64], strides = [1, 1]} : vector<8x256xf32> to vector<8x64xf32>
    %137 = math.tanh %136 : vector<8x64xf32>
    %138 = arith.mulf %133, %121 : vector<8x64xf32>
    %139 = arith.mulf %134, %137 : vector<8x64xf32>
    %140 = arith.addf %138, %139 : vector<8x64xf32>
    %141 = math.tanh %140 : vector<8x64xf32>
    %142 = arith.mulf %135, %141 : vector<8x64xf32>
    %c56 = arith.constant 56 : index
    %c0_33 = arith.constant 0 : index
    %143 = vector.load %arg6[%c56, %c0_33] : memref<64x256xf32, #tpu.memory_space<vmem>>, vector<8x256xf32>
    %cst_34 = arith.constant dense<0.000000e+00> : vector<8x256xf32>
    %144 = tpu.matmul %142, %1, %cst_34 {dimension_numbers = #tpu.dot_dimension_numbers<[1], [0], [0], [1], [0, 0, 1, 1], [], []>} : vector<8x64xf32>, vector<64x256xf32>, vector<8x256xf32> -> vector<8x256xf32>
    %145 = arith.addf %143, %144 : vector<8x256xf32>
    %146 = vector.extract_strided_slice %145 {offsets = [0, 0], sizes = [8, 192], strides = [1, 1]} : vector<8x256xf32> to vector<8x192xf32>
    %147 = arith.negf %146 : vector<8x192xf32>
    %148 = math.exp %147 : vector<8x192xf32>
    %cst_35 = arith.constant 1.000000e+00 : f32
    %149 = vector.broadcast %cst_35 : f32 to vector<8x192xf32>
    %150 = arith.addf %149, %148 : vector<8x192xf32>
    %151 = arith.divf %149, %150 : vector<8x192xf32>
    %152 = vector.extract_strided_slice %151 {offsets = [0, 0], sizes = [8, 64], strides = [1, 1]} : vector<8x192xf32> to vector<8x64xf32>
    %153 = vector.extract_strided_slice %151 {offsets = [0, 64], sizes = [8, 64], strides = [1, 1]} : vector<8x192xf32> to vector<8x64xf32>
    %154 = vector.extract_strided_slice %151 {offsets = [0, 128], sizes = [8, 64], strides = [1, 1]} : vector<8x192xf32> to vector<8x64xf32>
    %155 = vector.extract_strided_slice %145 {offsets = [0, 192], sizes = [8, 64], strides = [1, 1]} : vector<8x256xf32> to vector<8x64xf32>
    %156 = math.tanh %155 : vector<8x64xf32>
    %157 = arith.mulf %152, %140 : vector<8x64xf32>
    %158 = arith.mulf %153, %156 : vector<8x64xf32>
    %159 = arith.addf %157, %158 : vector<8x64xf32>
    %160 = math.tanh %159 : vector<8x64xf32>
    %161 = arith.mulf %154, %160 : vector<8x64xf32>
    %162 = tpu.concatenate %161, %159 in 1 : vector<8x64xf32>, vector<8x64xf32> -> vector<8x128xf32>
    %c0_36 = arith.constant 0 : index
    %c0_37 = arith.constant 0 : index
    %163 = vector.load %arg5[%c0_36, %c0_37] : memref<8x128xf32, #tpu.memory_space<vmem>>, vector<8x128xf32>
    tpu.vector_store %arg5[%c0_36, %c0_37], %162 {strides = array<i32>} : memref<8x128xf32, #tpu.memory_space<vmem>>, vector<8x128xf32>,
    %164 = tpu.concatenate %28, %47, %66, %85, %104, %123, %142, %161 in 0 : vector<8x64xf32>, vector<8x64xf32>, vector<8x64xf32>, vector<8x64xf32>, vector<8x64xf32>, vector<8x64xf32>, vector<8x64xf32>, vector<8x64xf32> -> vector<64x64xf32>
    %c0_38 = arith.constant 0 : index
    %c0_39 = arith.constant 0 : index
    %165 = vector.load %arg3[%c0_38, %c0_39] : memref<144x64xf32, #tpu.memory_space<vmem>>, vector<64x64xf32>
    %c64_40 = arith.constant 64 : index
    %c0_41 = arith.constant 0 : index
    %166 = vector.load %arg3[%c64_40, %c0_41] : memref<144x64xf32, #tpu.memory_space<vmem>>, vector<1x64xf32>
    %c72 = arith.constant 72 : index
    %c0_42 = arith.constant 0 : index
    %167 = vector.load %arg3[%c72, %c0_42] : memref<144x64xf32, #tpu.memory_space<vmem>>, vector<64x8xf32>
    %c136 = arith.constant 136 : index
    %c0_43 = arith.constant 0 : index
    %168 = vector.load %arg3[%c136, %c0_43] : memref<144x64xf32, #tpu.memory_space<vmem>>, vector<1x8xf32>
    %cst_44 = arith.constant dense<0.000000e+00> : vector<64x64xf32>
    %169 = tpu.matmul %164, %165, %cst_44 {dimension_numbers = #tpu.dot_dimension_numbers<[1], [0], [0], [1], [0, 0, 1, 1], [], []>} : vector<64x64xf32>, vector<64x64xf32>, vector<64x64xf32> -> vector<64x64xf32>
    %170 = vector.broadcast %166 : vector<1x64xf32> to vector<64x64xf32>
    %171 = arith.addf %169, %170 : vector<64x64xf32>
    %cst_45 = arith.constant 0.000000e+00 : f32
    %172 = vector.broadcast %cst_45 : f32 to vector<64x64xf32>
    %173 = arith.maximumf %171, %172 : vector<64x64xf32>
    %cst_46 = arith.constant dense<0.000000e+00> : vector<64x8xf32>
    %174 = tpu.matmul %173, %167, %cst_46 {dimension_numbers = #tpu.dot_dimension_numbers<[1], [0], [0], [1], [0, 0, 1, 1], [], []>} : vector<64x64xf32>, vector<64x8xf32>, vector<64x8xf32> -> vector<64x8xf32>
    %175 = vector.broadcast %168 : vector<1x8xf32> to vector<64x8xf32>
    %176 = arith.addf %174, %175 : vector<64x8xf32>
    %cst_47 = arith.constant 0.000000e+00 : f32
    %177 = vector.broadcast %cst_47 : f32 to vector<64x8xf32>
    %178 = arith.cmpf ogt, %176, %177 : vector<64x8xf32>
    %cst_48 = arith.constant 0.00999999977 : f32
    %179 = vector.broadcast %cst_48 : f32 to vector<64x8xf32>
    %180 = arith.mulf %179, %176 : vector<64x8xf32>
    %181 = arith.select %178, %176, %180 : vector<64x8xi1>, vector<64x8xf32>
    %c0_49 = arith.constant 0 : index
    %c0_50 = arith.constant 0 : index
    %182 = vector.load %arg4[%c0_49, %c0_50] : memref<64x8xf32, #tpu.memory_space<vmem>>, vector<64x8xf32>
    tpu.vector_store %arg4[%c0_49, %c0_50], %181 {strides = array<i32>} : memref<64x8xf32, #tpu.memory_space<vmem>>, vector<64x8xf32>,
    return
  }
}

</mosaic_0001>

<bundles_post_ra>
// kernel: model_forward.1
= control target key start
LH: loop header
LB: loop body
LE: loop exit
PB: predicated region body
PF: predicated region fallthrough
CT: control target
= control target key end

     0   :  { %v1818_v7 = vmov 0.0   ;;  %vm65_vm0 = vcmask 261120   ;;  %s1819_s8 = smov 64   ;;  %s2245_s0 = inlined_call_operand.vmem [shape: f32[64,32], index: 0, kind: input, shape index: {}]   ;;  %s2246_s1 = inlined_call_operand.vmem [shape: f32[8,128], index: 1, kind: input, shape index: {}]   ;;  %s2247_s2 = inlined_call_operand.vmem [shape: f32[104,256], index: 2, kind: input, shape index: {}]   ;;  %s2248_s3 = inlined_call_operand.vmem [shape: f32[144,64], index: 3, kind: input, shape index: {}]   ;;  %s2249_s4 = inlined_call_operand.hbm [shape: f32[64,8], index: 4, kind: output, shape index: {0}]   ;;  %s2250_s5 = inlined_call_operand.vmem [shape: f32[8,128], index: 5, kind: output, shape index: {1}]  }
   0x1   :  { %v21_v0 = vld [vmem:[%s2247_s2 + $0x8] sm:$0xff]  ;;  %v23_v1 = vld [vmem:[%s2247_s2 + $0x18] sm:$0xff]  ;;  %v20_v2 = vld [vmem:[%s2247_s2] sm:$0xff]  ;;  %154 = vmatprep.mubr.f32.mxu1 %v1818_v7  ;;  %493 = vmatprep.mubr.f32.mxu0 %v1818_v7 }
   0x2   :  { %v1493_v3 = vpack.c.bf16 %v23_v1, %v21_v0  ;;  %v22_v4 = vld [vmem:[%s2247_s2 + $0x10] sm:$0xff]  ;;  %v25_v5 = vld [vmem:[%s2247_s2 + $0x28] sm:$0xff]  ;;  %v27_v6 = vld [vmem:[%s2247_s2 + $0x38] sm:$0xff] }
   0x3   :  { %v1495_v8 = vpack.c.bf16 %v22_v4, %v20_v2  ;;  %v1497_v9 = vpack.c.bf16 %v27_v6, %v25_v5  ;;  %v24_v10 = vld [vmem:[%s2247_s2 + $0x20] sm:$0xff]  ;;  %v26_v11 = vld [vmem:[%s2247_s2 + $0x30] sm:$0xff]  ;;  %v29_v12 = vld [vmem:[%s2247_s2 + $0x48] sm:$0xff] }
   0x4   :  { %1494 = vmatprep.subr.bf16.mxu1 %v1493_v3  ;;  %v31_v13 = vld [vmem:[%s2247_s2 + $0x58] sm:$0xff]  ;;  %v28_v14 = vld [vmem:[%s2247_s2 + $0x40] sm:$0xff]  ;;  %v1499_v15 = vpack.c.bf16 %v26_v11, %v24_v10  ;;  %v30_v17 = vld [vmem:[%s2247_s2 + $0x50] sm:$0xff] }
   0x5   :  { %1496 = vmatpush1.bf16.msra.mxu1 %v1495_v8  ;;  %v1888_v16 = vpack.c.bf16 %v31_v13, %v29_v12  ;;  %v1893_v18 = vpack.c.bf16 %v30_v17, %v28_v14  ;;  %v33_v19 = vld [vmem:[%s2247_s2 + $0x68] sm:$0xff]  ;;  %v35_v20 = vld [vmem:[%s2247_s2 + $0x78] sm:$0xff]  ;;  %v46_v22 = vld [vmem:[%s2245_s0] sm:$0xff] }
   0x6   :  { %1498 = vmatprep.subr.bf16.mxu1 %v1497_v9  ;;  %v1901_v21 = vpack.c.bf16 %v35_v20, %v33_v19  ;;  %v32_v23 = vld [vmem:[%s2247_s2 + $0x60] sm:$0xff]  ;;  %v34_v24 = vld [vmem:[%s2247_s2 + $0x70] sm:$0xff]  ;;  %v37_v25 = vld [vmem:[%s2247_s2 + $0x88] sm:$0xff] }
   0x7   :  { %1534 = vmatprep.subr.bf16.mxu0 %v1888_v16  ;;  %v39_v26 = vld [vmem:[%s2247_s2 + $0x98] sm:$0xff]  ;;  %v219_v27 = vld [vmem:[%s2246_s1] sm:$0xff]  ;;  %v1926_v28 = vpack.c.bf16 %v34_v24, %v32_v23 }
   0x8   :  { %1536 = vmatpush1.bf16.msra.mxu0 %v1893_v18  ;;  %312 = vrot.lane.b32.xlu0 %v219_v27, %s1819_s8 }
   0x9   :  { %1500 = vmatpush1.bf16.msra.mxu1 %v1499_v15  ;;  %1538 = vmatprep.subr.bf16.mxu0 %v1901_v21 }
   0xa   :  { %1502 = vmatprep.subr.bf16.mxu1 %v1888_v16 }
   0xc   :  { %1355 = vmatmul.mubr.msk.f32.vlgmr.msra.gmra.mrb[0].mxu1 %vm65_vm0, %v46_v22 }
   0xd   :  { %11 = vsyncpa [#allocation4], 0  ;;  %1504 = vmatpush1.bf16.msra.mxu1 %v1893_v18  ;;  %160 = vmatprep.mubr.f32.mxu1 %v1818_v7  ;;  %v47_v29 = vld [vmem:[%s2245_s0 + $0x8] sm:$0xff]  ;;  %v1934_v30 = vpack.c.bf16 %v39_v26, %v37_v25  ;;  %v36_v31 = vld [vmem:[%s2247_s2 + $0x80] sm:$0xff]  ;;  %vm222_vm1 = vcmask 523264   ;;  %v55_v52 = vlaneseq  ;;  %vm1325_vm3 = vcmask 64512  }
   0xe   :  { %v38_v32 = vld [vmem:[%s2247_s2 + $0x90] sm:$0xff]  ;;  %1506 = vmatprep.subr.bf16.mxu1 %v1901_v21  ;;  %v41_v33 = vld [vmem:[%s2247_s2 + $0xa8] sm:$0xff]  ;;  %v43_v34 = vld [vmem:[%s2247_s2 + $0xb8] sm:$0xff]  ;;  %1540 = vmatpush1.bf16.msra.mxu0 %v1926_v28 }
   0xf   :  { %1542 = vmatprep.subr.bf16.mxu0 %v1934_v30  ;;  %v1952_v35 = vpack.c.bf16 %v38_v32, %v36_v31  ;;  %v48_v36 = vld [vmem:[%s2245_s0 + $0x10] sm:$0xff]  ;;  %v1959_v37 = vpack.c.bf16 %v43_v34, %v41_v33  ;;  %v40_v38 = vld [vmem:[%s2247_s2 + $0xa0] sm:$0xff]  ;;  %v49_v41 = vld [vmem:[%s2245_s0 + $0x18] sm:$0xff]  ;;  %v56_v55 = vshrl.u32 %v55_v52, 7 }
  0x10   :  { %1356 = vmatmul.mubr.msk.f32.gmra.mrb[2].mxu1 %vm65_vm0, %v47_v29  ;;  %v42_v39 = vld [vmem:[%s2247_s2 + $0xb0] sm:$0xff]  ;;  %v50_v42 = vld [vmem:[%s2245_s0 + $0x20] sm:$0xff]  ;;  %v51_v43 = vld [vmem:[%s2245_s0 + $0x28] sm:$0xff] }
  0x11   :  { %166 = vmatprep.mubr.f32.mxu1 %v1818_v7  ;;  %1508 = vmatpush1.bf16.msra.mxu1 %v1926_v28  ;;  %v1971_v40 = vpack.c.bf16 %v42_v39, %v40_v38  ;;  %v52_v44 = vld [vmem:[%s2245_s0 + $0x30] sm:$0xff]  ;;  %v53_v45 = vld [vmem:[%s2245_s0 + $0x38] sm:$0xff]  ;;  %v57_v58 = vsub.s32 0, %v56_v55  ;;  %v1354_v59 = vld [vmem:[%s2247_s2 + $0xc0] ss:$8 sm:$0x3] }
  0x12   :  { %1510 = vmatprep.subr.bf16.mxu1 %v1934_v30  ;;  %1544 = vmatpush1.bf16.msra.mxu0 %v1952_v35  ;;  %v61_v3 = vsub.s32 1, %v56_v55  ;;  %v1030_v25 = vld [vmem:[%s2248_s3] sm:$0xff]  ;;  %v1031_v26 = vld [vmem:[%s2248_s3 + $0x8] sm:$0xff]  ;;  %v1032_v39 = vld [vmem:[%s2248_s3 + $0x10] sm:$0xff] }
  0x13   :  { %1546 = vmatprep.subr.bf16.mxu0 %v1959_v37  ;;  %v2041_v62 = vrot.slane %v1354_v59, %v57_v58  ;;  %v1037_v55 = vld [vmem:[%s2248_s3 + $0x38] sm:$0xff] }
  0x14   :  { %1357 = vmatmul.mubr.msk.f32.gmra.mrb[4].mxu1 %vm65_vm0, %v48_v36  ;;  %v2044_v4 = vrot.slane %v1354_v59, %v61_v3 }
  0x15   :  { %172 = vmatprep.mubr.f32.mxu1 %v1818_v7  ;;  %1512 = vmatpush1.bf16.msra.mxu1 %v1952_v35 }
  0x16   :  { %1514 = vmatprep.subr.bf16.mxu1 %v1959_v37  ;;  %1548 = vmatpush1.bf16.msra.mxu0 %v1971_v40 }
  0x17   :  { %1550 = vmatprep.subr.bf16.mxu0 %v1888_v16 }
  0x18   :  { %1358 = vmatmul.mubr.msk.f32.gmra.mrb[6].mxu1 %vm65_vm0, %v49_v41  ;;  %v1033_v41 = vld [vmem:[%s2248_s3 + $0x18] sm:$0xff] }
  0x19   :  { %178 = vmatprep.mubr.f32.mxu1 %v1818_v7  ;;  %1516 = vmatpush1.bf16.msra.mxu1 %v1971_v40 }
  0x1a   :  { %1518 = vmatprep.subr.bf16.mxu1 %v1888_v16 }
  0x1c   :  { %1359 = vmatmul.mubr.msk.f32.gmra.mrb[8].mxu1 %vm65_vm0, %v50_v42  ;;  %v1633_v42 = vpack.c.bf16 %v1033_v41, %v1032_v39 }
  0x1d   :  { %184 = vmatprep.mubr.f32.mxu1 %v1818_v7 }
  0x20   :  { %1360 = vmatmul.mubr.msk.f32.gmra.mrb[10].mxu1 %vm65_vm0, %v51_v43  ;;  %v1034_v43 = vld [vmem:[%s2248_s3 + $0x20] sm:$0xff] }
  0x21   :  { %190 = vmatprep.mubr.f32.mxu1 %v1818_v7 }
  0x24   :  { %1361 = vmatmul.mubr.msk.f32.gmra.mrb[12].mxu1 %vm65_vm0, %v52_v44  ;;  %v1035_v44 = vld [vmem:[%s2248_s3 + $0x28] sm:$0xff] }
  0x25   :  { %196 = vmatprep.mubr.f32.mxu1 %v1818_v7  ;;  %v1637_v52 = vpack.c.bf16 %v1035_v44, %v1034_v43 }
  0x28   :  { %1362 = vmatmul.mubr.msk.f32.gmra.mrb[14].mxu1 %vm65_vm0, %v53_v45  ;;  %v1036_v45 = vld [vmem:[%s2248_s3 + $0x30] sm:$0xff] }
  0x29   :  { %290 = vmatprep.mubr.f32.mxu1 %v1818_v7  ;;  %v1641_v58 = vpack.c.bf16 %v1037_v55, %v1036_v45 }
  0x2c   :  { %1363 = vmatmul.mubr.msk.f32.vlgmr.msra.gmra.mrb[0].mxu1 %vm222_vm1, %v219_v27  ;;  %v1629_v27 = vpack.c.bf16 %v1031_v26, %v1030_v25 }
  0x2d   :  { %1520 = vmatpush1.bf16.msra.mxu1 %v1893_v18  ;;  %393 = vmatprep.mubr.f32.mxu1 %v1818_v7 }
  0x2e   :  { %1522 = vmatprep.subr.bf16.mxu1 %v1901_v21 }
  0x31   :  { %1524 = vmatpush1.bf16.msra.mxu1 %v1926_v28 }
  0x32   :  { %1526 = vmatprep.subr.bf16.mxu1 %v1934_v30 }
  0x35   :  { %1528 = vmatpush1.bf16.msra.mxu1 %v1952_v35 }
  0x36   :  { %1530 = vmatprep.subr.bf16.mxu1 %v1959_v37 }
  0x39   :  { %1532 = vmatpush1.bf16.msra.mxu1 %v1971_v40 }
  0x3a   :  { %1630 = vmatprep.subr.bf16.mxu1 %v1629_v27 }
  0x7a   :  { %v313_v14 = vpop.permute.xlu0 %312 }
  0xe7   :  { %v2014_v46 = vpop.f32.mrb[4].mxu1 }
  0xe8   :  { %v2016_v47 = vpop.f32.mrb[5].mxu1 }
  0xeb   :  { %v2018_v48 = vpop.f32.mrb[6].mxu1 }
  0xec   :  { %v2020_v49 = vpop.f32.mrb[7].mxu1  ;;  %v175_v41 = vadd.f32 %v2018_v48, %v2041_v62 }
  0xef   :  { %v2022_v50 = vpop.f32.mrb[8].mxu1 }
  0xf0   :  { %v2024_v51 = vpop.f32.mrb[9].mxu1 }
  0xf3   :  { %v2026_v53 = vpop.f32.mrb[10].mxu1 }
  0xf4   :  { %v2028_v54 = vpop.f32.mrb[11].mxu1 }
  0xf7   :  { %v2030_v56 = vpop.f32.mrb[12].mxu1 }
  0xf8   :  { %v2032_v57 = vpop.f32.mrb[13].mxu1 }
  0xfb   :  { %v2037_v60 = vpop.f32.mrb[14].mxu1 }
  0xfc   :  { %v2039_v61 = vpop.f32.mrb[15].mxu1 }
  0xff   :  { %v292_v63 = vpop.f32.mrb[0].mxu1 }
 0x100   :  { %v1661_v0 = vadd.f32 %v292_v63, %v2041_v62  ;;  %v294_v1 = vpop.f32.mrb[1].mxu1 }
 0x101   :  { %v1662_v5 = vadd.f32 %v294_v1, %v2044_v4 }
 0x102   :  { %v1364_v2 = vmul.f32 -1.442695, %v1661_v0 }
 0x103   :  { %v1365_v12 = vmul.f32 -1.442695, %v1662_v5 }
 0x104   :  { %1698 = vpow2.f32 %v1364_v2 }
 0x105   :  { %1700 = vtanh.f32 %v1662_v5 }
 0x10e   :  { %v1699_v6 = vpop.eup %1698 }
 0x10f   :  { %v305_v8 = vadd.f32 1.0, %v1699_v6  ;;  %v1701_v9 = vpop.eup %1700 }
 0x111   :  { %1702 = vrcp.f32 %v305_v8 }
 0x112   :  { %1704 = vpow2.f32 %v1365_v12  ;;  %v169_v12 = vadd.f32 %v2014_v46, %v2041_v62 }
 0x11b   :  { %v1703_v10 = vpop.eup %1702 }
 0x11c   :  { %v316_v11 = vmul.f32 %v1703_v10, %v1701_v9  ;;  %v1705_v13 = vpop.eup %1704  ;;  %v315_v17 = vmul.f32 %v1703_v10, %v313_v14 }
 0x11d   :  { %v306_v15 = vadd.f32 1.0, %v1705_v13  ;;  %v171_v13 = vadd.f32 %v2016_v47, %v2044_v4 }
 0x11e   :  { %318 = vrot.lane.b32.xlu0 %v316_v11, %s1819_s8 }
 0x11f   :  { %1706 = vrcp.f32 %v306_v15 }
 0x129   :  { %v1707_v22 = vpop.eup %1706 }
 0x190   :  { %v319_v19 = vpop.permute.xlu0 %318 }
 0x191   :  { %v321_v20 = vadd.f32 %v319_v19, %v315_v17 }
 0x193   :  { %1708 = vtanh.f32 %v321_v20 }
 0x19d   :  { %v1709_v23 = vpop.eup %1708 }
 0x19e   :  { %v323_v24 = vmul.f32 %v1709_v23, %v1707_v22 }
 0x1a0   :  { %1366 = vmatmul.mubr.msk.f32.vlgmr.msra.gmra.mrb[2].mxu1 %vm222_vm1, %v323_v24 }
 0x1a1   :  { %1453 = vmatprep.mubr.msk.f32.mxu1 %vm222_vm1, %v323_v24  ;;  %1632 = vmatpush3.bf16.msra.mxu1 %v1629_v27 }
 0x1a2   :  { %1634 = vmatprep.subr.bf16.mxu1 %v1633_v42 }
 0x1a5   :  { %1636 = vmatpush3.bf16.msra.mxu1 %v1633_v42  ;;  %v177_v42 = vadd.f32 %v2020_v49, %v2044_v4 }
 0x1a6   :  { %1638 = vmatprep.subr.bf16.mxu1 %v1637_v52 }
 0x1a9   :  { %1640 = vmatpush3.bf16.msra.mxu1 %v1637_v52 }
 0x1aa   :  { %1642 = vmatprep.subr.bf16.mxu1 %v1641_v58 }
 0x1ad   :  { %1644 = vmatpush3.bf16.msra.mxu1 %v1641_v58 }
 0x273   :  { %v395_v29 = vpop.f32.mrb[2].mxu1 }
 0x274   :  { %v1663_v31 = vadd.f32 %v395_v29, %v2041_v62  ;;  %v397_v32 = vpop.f32.mrb[3].mxu1 }
 0x275   :  { %v1664_v34 = vadd.f32 %v397_v32, %v2044_v4 }
 0x276   :  { %v1367_v33 = vmul.f32 -1.442695, %v1663_v31 }
 0x277   :  { %v1368_v1 = vmul.f32 -1.442695, %v1664_v34 }
 0x278   :  { %1710 = vpow2.f32 %v1367_v33 }
 0x279   :  { %1712 = vtanh.f32 %v1664_v34 }
 0x282   :  { %v1711_v36 = vpop.eup %1710 }
 0x283   :  { %v408_v38 = vadd.f32 1.0, %v1711_v36  ;;  %v1713_v59 = vpop.eup %1712 }
 0x285   :  { %1714 = vrcp.f32 %v408_v38 }
 0x286   :  { %1716 = vpow2.f32 %v1368_v1 }
 0x28f   :  { %v1715_v63 = vpop.eup %1714 }
 0x290   :  { %v416_v0 = vmul.f32 %v1715_v63, %v1713_v59  ;;  %v1717_v2 = vpop.eup %1716  ;;  %v415_v5 = vmul.f32 %v1715_v63, %v321_v20 }
 0x291   :  { %v409_v3 = vadd.f32 1.0, %v1717_v2 }
 0x292   :  { %418 = vrot.lane.b32.xlu1 %v416_v0, %s1819_s8 }
 0x293   :  { %1718 = vrcp.f32 %v409_v3 }
 0x29d   :  { %v1719_v9 = vpop.eup %1718 }
 0x304   :  { %v419_v6 = vpop.permute.xlu1 %418 }
 0x305   :  { %v421_v8 = vadd.f32 %v419_v6, %v415_v5 }
 0x307   :  { %1720 = vtanh.f32 %v421_v8 }
 0x311   :  { %v1721_v10 = vpop.eup %1720 }
 0x312   :  { %v423_v11 = vmul.f32 %v1721_v10, %v1719_v9 }
 0x314   :  { %1369 = vmatmul.mubr.msk.f32.vlgmr.msra.gmra.mrb[0].mxu0 %vm222_vm1, %v423_v11  ;;  %1454 = vmatmul.mubr.msk.f32.vlgmr.msra.gmra.mrb[16].mxu1 %vm222_vm1, %v423_v11  ;;  %v181_v11 = vadd.f32 %v2022_v50, %v2041_v62 }
 0x315   :  { %1552 = vmatpush1.bf16.msra.mxu0 %v1893_v18  ;;  %593 = vmatprep.mubr.f32.mxu0 %v1818_v7 }
 0x316   :  { %1554 = vmatprep.subr.bf16.mxu0 %v1901_v21 }
 0x319   :  { %1556 = vmatpush1.bf16.msra.mxu0 %v1926_v28 }
 0x31a   :  { %1558 = vmatprep.subr.bf16.mxu0 %v1934_v30 }
 0x31d   :  { %1560 = vmatpush1.bf16.msra.mxu0 %v1952_v35 }
 0x31e   :  { %1562 = vmatprep.subr.bf16.mxu0 %v1959_v37 }
 0x321   :  { %1564 = vmatpush1.bf16.msra.mxu0 %v1971_v40 }
 0x322   :  { %1566 = vmatprep.subr.bf16.mxu0 %v1888_v16 }
 0x3e7   :  { %v495_v14 = vpop.f32.mrb[0].mxu0  ;;  %v2092_v15 = vpop.f32.mrb[16].mxu1 }
 0x3e8   :  { %v500_v17 = vadd.f32 %v495_v14, %v169_v12  ;;  %v497_v19 = vpop.f32.mrb[1].mxu0  ;;  %v2094_v20 = vpop.f32.mrb[17].mxu1  ;;  %v183_v12 = vadd.f32 %v2024_v51, %v2044_v4 }
 0x3e9   :  { %v501_v22 = vadd.f32 %v497_v19, %v171_v13 }
 0x3ea   :  { %v1370_v23 = vmul.f32 -1.442695, %v500_v17 }
 0x3eb   :  { %v1371_v47 = vmul.f32 -1.442695, %v501_v22 }
 0x3ec   :  { %1722 = vpow2.f32 %v1370_v23 }
 0x3ed   :  { %1724 = vtanh.f32 %v501_v22 }
 0x3f6   :  { %v1723_v24 = vpop.eup %1722 }
 0x3f7   :  { %v508_v25 = vadd.f32 1.0, %v1723_v24  ;;  %v1725_v26 = vpop.eup %1724 }
 0x3f9   :  { %1726 = vrcp.f32 %v508_v25 }
 0x3fa   :  { %1728 = vpow2.f32 %v1371_v47 }
 0x403   :  { %v1727_v27 = vpop.eup %1726 }
 0x404   :  { %v516_v46 = vmul.f32 %v1727_v27, %v1725_v26  ;;  %v1729_v29 = vpop.eup %1728  ;;  %v515_v32 = vmul.f32 %v1727_v27, %v421_v8 }
 0x405   :  { %v509_v31 = vadd.f32 1.0, %v1729_v29 }
 0x406   :  { %518 = vrot.lane.b32.xlu1 %v516_v46, %s1819_s8 }
 0x407   :  { %1730 = vrcp.f32 %v509_v31 }
 0x411   :  { %v1731_v36 = vpop.eup %1730 }
 0x478   :  { %v519_v33 = vpop.permute.xlu1 %518 }
 0x479   :  { %v521_v34 = vadd.f32 %v519_v33, %v515_v32 }
 0x47b   :  { %1732 = vtanh.f32 %v521_v34 }
 0x485   :  { %v1733_v38 = vpop.eup %1732 }
 0x486   :  { %v523_v39 = vmul.f32 %v1733_v38, %v1731_v36 }
 0x488   :  { %1372 = vmatmul.mubr.msk.f32.vlgmr.msra.gmra.mrb[2].mxu0 %vm222_vm1, %v523_v39  ;;  %1456 = vmatprep.mubr.msk.f32.mxu1 %vm222_vm1, %v523_v39  ;;  %v187_v39 = vadd.f32 %v2026_v53, %v2041_v62 }
 0x489   :  { %1568 = vmatpush1.bf16.msra.mxu0 %v1893_v18  ;;  %693 = vmatprep.mubr.f32.mxu0 %v1818_v7 }
 0x48a   :  { %1570 = vmatprep.subr.bf16.mxu0 %v1901_v21 }
 0x48d   :  { %1572 = vmatpush1.bf16.msra.mxu0 %v1926_v28 }
 0x48e   :  { %1574 = vmatprep.subr.bf16.mxu0 %v1934_v30 }
 0x491   :  { %1576 = vmatpush1.bf16.msra.mxu0 %v1952_v35 }
 0x492   :  { %1578 = vmatprep.subr.bf16.mxu0 %v1959_v37 }
 0x495   :  { %1580 = vmatpush1.bf16.msra.mxu0 %v1971_v40 }
 0x496   :  { %1582 = vmatprep.subr.bf16.mxu0 %v1888_v16 }
 0x55b   :  { %v595_v43 = vpop.f32.mrb[2].mxu0 }
 0x55c   :  { %v600_v44 = vadd.f32 %v595_v43, %v175_v41  ;;  %v597_v45 = vpop.f32.mrb[3].mxu0  ;;  %v189_v41 = vadd.f32 %v2028_v54, %v2044_v4 }
 0x55d   :  { %v601_v52 = vadd.f32 %v597_v45, %v177_v42 }
 0x55e   :  { %v1373_v55 = vmul.f32 -1.442695, %v600_v44 }
 0x55f   :  { %v1374_v2 = vmul.f32 -1.442695, %v601_v52 }
 0x560   :  { %1734 = vpow2.f32 %v1373_v55 }
 0x561   :  { %1736 = vtanh.f32 %v601_v52 }
 0x56a   :  { %v1735_v58 = vpop.eup %1734 }
 0x56b   :  { %v608_v59 = vadd.f32 1.0, %v1735_v58  ;;  %v1737_v63 = vpop.eup %1736 }
 0x56d   :  { %1738 = vrcp.f32 %v608_v59 }
 0x56e   :  { %1740 = vpow2.f32 %v1374_v2 }
 0x577   :  { %v1739_v0 = vpop.eup %1738 }
 0x578   :  { %v616_v1 = vmul.f32 %v1739_v0, %v1737_v63  ;;  %v1741_v48 = vpop.eup %1740  ;;  %v615_v49 = vmul.f32 %v1739_v0, %v521_v34 }
 0x579   :  { %v609_v3 = vadd.f32 1.0, %v1741_v48 }
 0x57a   :  { %618 = vrot.lane.b32.xlu0 %v616_v1, %s1819_s8 }
 0x57b   :  { %1742 = vrcp.f32 %v609_v3 }
 0x585   :  { %v1743_v8 = vpop.eup %1742 }
 0x5ec   :  { %v619_v5 = vpop.permute.xlu0 %618 }
 0x5ed   :  { %v621_v6 = vadd.f32 %v619_v5, %v615_v49 }
 0x5ef   :  { %1744 = vtanh.f32 %v621_v6 }
 0x5f9   :  { %v1745_v9 = vpop.eup %1744 }
 0x5fa   :  { %v623_v10 = vmul.f32 %v1745_v9, %v1743_v8 }
 0x5fc   :  { %1375 = vmatmul.mubr.msk.f32.vlgmr.msra.gmra.mrb[4].mxu0 %vm222_vm1, %v623_v10  ;;  %1457 = vmatmul.mubr.msk.f32.gmra.mrb[18].mxu1 %vm222_vm1, %v623_v10 }
 0x5fd   :  { %1584 = vmatpush1.bf16.msra.mxu0 %v1893_v18  ;;  %793 = vmatprep.mubr.f32.mxu0 %v1818_v7 }
 0x5fe   :  { %1586 = vmatprep.subr.bf16.mxu0 %v1901_v21 }
 0x601   :  { %1588 = vmatpush1.bf16.msra.mxu0 %v1926_v28 }
 0x602   :  { %1590 = vmatprep.subr.bf16.mxu0 %v1934_v30 }
 0x605   :  { %1592 = vmatpush1.bf16.msra.mxu0 %v1952_v35 }
 0x606   :  { %1594 = vmatprep.subr.bf16.mxu0 %v1959_v37 }
 0x609   :  { %1596 = vmatpush1.bf16.msra.mxu0 %v1971_v40 }
 0x60a   :  { %1598 = vmatprep.subr.bf16.mxu0 %v1888_v16 }
 0x6cf   :  { %v695_v13 = vpop.f32.mrb[4].mxu0  ;;  %v2128_v14 = vpop.f32.mrb[18].mxu1 }
 0x6d0   :  { %v700_v17 = vadd.f32 %v695_v13, %v181_v11  ;;  %v697_v19 = vpop.f32.mrb[5].mxu0  ;;  %v2130_v22 = vpop.f32.mrb[19].mxu1 }
 0x6d1   :  { %v701_v23 = vadd.f32 %v697_v19, %v183_v12 }
 0x6d2   :  { %v1376_v24 = vmul.f32 -1.442695, %v700_v17 }
 0x6d3   :  { %v1377_v51 = vmul.f32 -1.442695, %v701_v23 }
 0x6d4   :  { %1746 = vpow2.f32 %v1376_v24 }
 0x6d5   :  { %1748 = vtanh.f32 %v701_v23 }
 0x6de   :  { %v1747_v25 = vpop.eup %1746 }
 0x6df   :  { %v708_v26 = vadd.f32 1.0, %v1747_v25  ;;  %v1749_v27 = vpop.eup %1748 }
 0x6e1   :  { %1750 = vrcp.f32 %v708_v26 }
 0x6e2   :  { %1752 = vpow2.f32 %v1377_v51 }
 0x6eb   :  { %v1751_v46 = vpop.eup %1750 }
 0x6ec   :  { %v716_v50 = vmul.f32 %v1751_v46, %v1749_v27  ;;  %v1753_v47 = vpop.eup %1752  ;;  %v715_v31 = vmul.f32 %v1751_v46, %v621_v6  ;;  %v193_v6 = vadd.f32 %v2030_v56, %v2041_v62  ;;  %v199_v27 = vadd.f32 %v2037_v60, %v2041_v62  ;;  %v1040_v60 = vld [vmem:[%s2248_s3 + $0x50] sm:$0xff] }
 0x6ed   :  { %v709_v29 = vadd.f32 1.0, %v1753_v47  ;;  %v201_v46 = vadd.f32 %v2039_v61, %v2044_v4  ;;  %v1041_v61 = vld [vmem:[%s2248_s3 + $0x58] sm:$0xff] }
 0x6ee   :  { %718 = vrot.lane.b32.xlu1 %v716_v50, %s1819_s8 }
 0x6ef   :  { %1754 = vrcp.f32 %v709_v29 }
 0x6f9   :  { %v1755_v34 = vpop.eup %1754 }
 0x760   :  { %v719_v32 = vpop.permute.xlu1 %718 }
 0x761   :  { %v721_v33 = vadd.f32 %v719_v32, %v715_v31 }
 0x763   :  { %1756 = vtanh.f32 %v721_v33 }
 0x76d   :  { %v1757_v36 = vpop.eup %1756 }
 0x76e   :  { %v723_v38 = vmul.f32 %v1757_v36, %v1755_v34  ;;  %v1039_v34 = vld [vmem:[%s2248_s3 + $0x48] sm:$0xff] }
 0x76f   :  { %v1645_v62 = vpack.c.bf16 %v1040_v60, %v1039_v34  ;;  %v1043_v36 = vld [vmem:[%s2248_s3 + $0x68] sm:$0xff] }
 0x770   :  { %1378 = vmatmul.mubr.msk.f32.vlgmr.msra.gmra.mrb[6].mxu0 %vm222_vm1, %v723_v38  ;;  %1459 = vmatprep.mubr.msk.f32.mxu1 %vm222_vm1, %v723_v38 }
 0x771   :  { %1600 = vmatpush1.bf16.msra.mxu0 %v1893_v18  ;;  %893 = vmatprep.mubr.f32.mxu0 %v1818_v7 }
 0x772   :  { %1602 = vmatprep.subr.bf16.mxu0 %v1901_v21  ;;  %1646 = vmatprep.subr.bf16.mxu1 %v1645_v62 }
 0x773   :  { %1648 = vmatpush3.bf16.msra.mxu1 %v1645_v62 }
 0x775   :  { %1604 = vmatpush1.bf16.msra.mxu0 %v1926_v28 }
 0x776   :  { %1606 = vmatprep.subr.bf16.mxu0 %v1934_v30 }
 0x779   :  { %1608 = vmatpush1.bf16.msra.mxu0 %v1952_v35 }
 0x77a   :  { %1610 = vmatprep.subr.bf16.mxu0 %v1959_v37 }
 0x77d   :  { %1612 = vmatpush1.bf16.msra.mxu0 %v1971_v40 }
 0x77e   :  { %1614 = vmatprep.subr.bf16.mxu0 %v1888_v16 }
 0x843   :  { %v795_v42 = vpop.f32.mrb[6].mxu0 }
 0x844   :  { %v800_v43 = vadd.f32 %v795_v42, %v187_v39  ;;  %v797_v44 = vpop.f32.mrb[7].mxu0  ;;  %v1044_v39 = vld [vmem:[%s2248_s3 + $0x70] sm:$0xff] }
 0x845   :  { %v801_v45 = vadd.f32 %v797_v44, %v189_v41  ;;  %v1653_v41 = vpack.c.bf16 %v1044_v39, %v1043_v36 }
 0x846   :  { %v1379_v52 = vmul.f32 -1.442695, %v800_v43 }
 0x847   :  { %v1380_v16 = vmul.f32 -1.442695, %v801_v45 }
 0x848   :  { %1758 = vpow2.f32 %v1379_v52  ;;  %v1046_v52 = vld [vmem:[%s2248_s3 + $0x80] sm:$0xff] }
 0x849   :  { %1760 = vtanh.f32 %v801_v45  ;;  %v1045_v45 = vld [vmem:[%s2248_s3 + $0x78] sm:$0xff] }
 0x852   :  { %v1759_v55 = vpop.eup %1758 }
 0x853   :  { %v808_v58 = vadd.f32 1.0, %v1759_v55  ;;  %v1761_v59 = vpop.eup %1760  ;;  %v1657_v55 = vpack.c.bf16 %v1046_v52, %v1045_v45 }
 0x855   :  { %1762 = vrcp.f32 %v808_v58 }
 0x856   :  { %1764 = vpow2.f32 %v1380_v16 }
 0x85f   :  { %v1763_v63 = vpop.eup %1762 }
 0x860   :  { %v816_v0 = vmul.f32 %v1763_v63, %v1761_v59  ;;  %v1765_v53 = vpop.eup %1764  ;;  %v815_v54 = vmul.f32 %v1763_v63, %v721_v33 }
 0x861   :  { %v809_v1 = vadd.f32 1.0, %v1765_v53 }
 0x862   :  { %818 = vrot.lane.b32.xlu0 %v816_v0, %s1819_s8 }
 0x863   :  { %1766 = vrcp.f32 %v809_v1  ;;  %v1387_v1 = vld [vmem:[%s2248_s3 + $0x40] ss:$0 sm:$0xff] }
 0x86d   :  { %v1767_v3 = vpop.eup %1766 }
 0x8d4   :  { %v819_v2 = vpop.permute.xlu0 %818 }
 0x8d5   :  { %v821_v48 = vadd.f32 %v819_v2, %v815_v54  ;;  %v1122_v54 = vadd.f32 %v1387_v1, %v2094_v20 }
 0x8d7   :  { %1768 = vtanh.f32 %v821_v48 }
 0x8e1   :  { %v1769_v49 = vpop.eup %1768 }
 0x8e2   :  { %v823_v5 = vmul.f32 %v1769_v49, %v1767_v3  ;;  %v1127_v3 = vadd.f32 %v2092_v15, %v1387_v1 }
 0x8e4   :  { %1381 = vmatmul.mubr.msk.f32.vlgmr.msra.gmra.mrb[8].mxu0 %vm222_vm1, %v823_v5  ;;  %1460 = vmatmul.mubr.msk.f32.gmra.mrb[20].mxu1 %vm222_vm1, %v823_v5  ;;  %v1160_v5 = vmax.f32 %v1122_v54, 0.0 }
 0x8e5   :  { %1616 = vmatpush1.bf16.msra.mxu0 %v1893_v18  ;;  %993 = vmatprep.mubr.f32.mxu0 %v1818_v7  ;;  %v195_v18 = vadd.f32 %v2032_v57, %v2044_v4  ;;  %v1042_v4 = vld [vmem:[%s2248_s3 + $0x60] sm:$0xff] }
 0x8e6   :  { %1618 = vmatprep.subr.bf16.mxu0 %v1901_v21  ;;  %v1649_v38 = vpack.c.bf16 %v1042_v4, %v1041_v61 }
 0x8e8   :  { %1650 = vmatprep.subr.bf16.mxu1 %v1649_v38 }
 0x8e9   :  { %1620 = vmatpush1.bf16.msra.mxu0 %v1926_v28  ;;  %1652 = vmatpush3.bf16.msra.mxu1 %v1649_v38 }
 0x8ea   :  { %1622 = vmatprep.subr.bf16.mxu0 %v1934_v30  ;;  %1654 = vmatprep.subr.bf16.mxu1 %v1653_v41 }
 0x8ed   :  { %1624 = vmatpush1.bf16.msra.mxu0 %v1952_v35  ;;  %1656 = vmatpush3.bf16.msra.mxu1 %v1653_v41 }
 0x8ee   :  { %1626 = vmatprep.subr.bf16.mxu0 %v1959_v37  ;;  %1658 = vmatprep.subr.bf16.mxu1 %v1657_v55 }
 0x8f1   :  { %1628 = vmatpush1.bf16.msra.mxu0 %v1971_v40  ;;  %1660 = vmatpush3.bf16.msra.mxu1 %v1657_v55 }
 0x9b7   :  { %v895_v8 = vpop.f32.mrb[8].mxu0  ;;  %v2163_v7 = vpop.f32.mrb[20].mxu1 }
 0x9b8   :  { %v900_v21 = vadd.f32 %v895_v8, %v193_v6  ;;  %v897_v9 = vpop.f32.mrb[9].mxu0  ;;  %v2165_v28 = vpop.f32.mrb[21].mxu1  ;;  %v1132_v6 = vadd.f32 %v1387_v1, %v2130_v22  ;;  %v1137_v8 = vadd.f32 %v2128_v14, %v1387_v1  ;;  %v1147_v15 = vadd.f32 %v2163_v7, %v1387_v1  ;;  %v1396_v7 = vld [vmem:[%s2248_s3 + $0x88] ss:$0 sm:$0xff]  ;;  %s1820_s3 = smov [#allocation3]  }
 0x9b9   :  { %v901_v30 = vadd.f32 %v897_v9, %v195_v18  ;;  %v1161_v18 = vmax.f32 %v1127_v3, 0.0  ;;  %v1142_v9 = vadd.f32 %v1387_v1, %v2165_v28 }
 0x9ba   :  { %v1382_v10 = vmul.f32 -1.442695, %v900_v21  ;;  %v1162_v21 = vmax.f32 %v1132_v6, 0.0  ;;  %v1163_v20 = vmax.f32 %v1137_v8, 0.0  ;;  %v1165_v22 = vmax.f32 %v1147_v15, 0.0 }
 0x9bb   :  { %v1383_v57 = vmul.f32 -1.442695, %v901_v30 }
 0x9bc   :  { %1770 = vpow2.f32 %v1382_v10 }
 0x9bd   :  { %1772 = vtanh.f32 %v901_v30  ;;  %v1164_v30 = vmax.f32 %v1142_v9, 0.0 }
 0x9c6   :  { %v1771_v35 = vpop.eup %1770 }
 0x9c7   :  { %v908_v37 = vadd.f32 1.0, %v1771_v35  ;;  %v1773_v40 = vpop.eup %1772 }
 0x9c9   :  { %1774 = vrcp.f32 %v908_v37 }
 0x9ca   :  { %1776 = vpow2.f32 %v1383_v57 }
 0x9d3   :  { %v1775_v11 = vpop.eup %1774 }
 0x9d4   :  { %v916_v56 = vmul.f32 %v1775_v11, %v1773_v40  ;;  %v1777_v12 = vpop.eup %1776  ;;  %v915_v17 = vmul.f32 %v1775_v11, %v821_v48 }
 0x9d5   :  { %v909_v13 = vadd.f32 1.0, %v1777_v12 }
 0x9d6   :  { %918 = vrot.lane.b32.xlu1 %v916_v56, %s1819_s8 }
 0x9d7   :  { %1778 = vrcp.f32 %v909_v13 }
 0x9e1   :  { %v1779_v24 = vpop.eup %1778 }
 0xa48   :  { %v919_v19 = vpop.permute.xlu1 %918 }
 0xa49   :  { %v921_v23 = vadd.f32 %v919_v19, %v915_v17 }
 0xa4b   :  { %1780 = vtanh.f32 %v921_v23 }
 0xa55   :  { %v1781_v25 = vpop.eup %1780 }
 0xa56   :  { %v923_v26 = vmul.f32 %v1781_v25, %v1779_v24 }
 0xa58   :  { %1384 = vmatmul.mubr.msk.f32.vlgmr.msra.gmra.mrb[10].mxu0 %vm222_vm1, %v923_v26  ;;  %1462 = vmatprep.mubr.msk.f32.mxu1 %vm222_vm1, %v923_v26 }
 0xb2b   :  { %v995_v50 = vpop.f32.mrb[10].mxu0 }
 0xb2c   :  { %v1000_v51 = vadd.f32 %v995_v50, %v199_v27  ;;  %v997_v47 = vpop.f32.mrb[11].mxu0 }
 0xb2d   :  { %v1001_v29 = vadd.f32 %v997_v47, %v201_v46 }
 0xb2e   :  { %v1385_v31 = vmul.f32 -1.442695, %v1000_v51 }
 0xb2f   :  { %v1386_v58 = vmul.f32 -1.442695, %v1001_v29 }
 0xb30   :  { %1782 = vpow2.f32 %v1385_v31 }
 0xb31   :  { %1784 = vtanh.f32 %v1001_v29 }
 0xb3a   :  { %v1783_v32 = vpop.eup %1782 }
 0xb3b   :  { %v1008_v33 = vadd.f32 1.0, %v1783_v32  ;;  %v1785_v42 = vpop.eup %1784 }
 0xb3d   :  { %1786 = vrcp.f32 %v1008_v33 }
 0xb3e   :  { %1788 = vpow2.f32 %v1386_v58 }
 0xb47   :  { %v1787_v43 = vpop.eup %1786 }
 0xb48   :  { %v1016_v44 = vmul.f32 %v1787_v43, %v1785_v42  ;;  %v1789_v59 = vpop.eup %1788  ;;  %v1015_v0 = vmul.f32 %v1787_v43, %v921_v23 }
 0xb49   :  { %v1009_v63 = vadd.f32 1.0, %v1789_v59 }
 0xb4a   :  { %1018 = vrot.lane.b32.xlu0 %v1016_v44, %s1819_s8 }
 0xb4b   :  { %1790 = vrcp.f32 %v1009_v63 }
 0xb55   :  { %v1791_v2 = vpop.eup %1790 }
 0xbbc   :  { %v1019_v16 = vpop.permute.xlu0 %1018 }
 0xbbd   :  { %v1021_v53 = vadd.f32 %v1019_v16, %v1015_v0 }
 0xbbf   :  { %1792 = vtanh.f32 %v1021_v53  ;;  %1025 = vrot.lane.b32.xlu1 %v1021_v53, %s1819_s8 }
 0xbc9   :  { %v1793_v48 = vpop.eup %1792 }
 0xbca   :  { %v1023_v49 = vmul.f32 %v1793_v48, %v1791_v2 }
 0xbcc   :  { %1463 = vmatmul.mubr.msk.f32.gmra.mrb[22].mxu1 %vm222_vm1, %v1023_v49 }
 0xbcd   :  { %1481 = vmatprep.mubr.msk.f32.mxu1 %vm222_vm1, %v1160_v5 }
 0xbd0   :  { %1482 = vmatmul.mubr.msk.f32.vlgmr.msra.gmra.mrb[24].mxu1 %vm222_vm1, %v1161_v18 }
 0xbd1   :  { %1484 = vmatprep.mubr.msk.f32.mxu1 %vm222_vm1, %v1162_v21 }
 0xbd4   :  { %1485 = vmatmul.mubr.msk.f32.gmra.mrb[26].mxu1 %vm222_vm1, %v1163_v20 }
 0xbd5   :  { %1487 = vmatprep.mubr.msk.f32.mxu1 %vm222_vm1, %v1164_v30 }
 0xbd8   :  { %1488 = vmatmul.mubr.msk.f32.gmra.mrb[28].mxu1 %vm222_vm1, %v1165_v22 }
 0xc31   :  { %v1026_v10 = vpop.permute.xlu1 %1025 }
 0xc32   :  { %v1028_v14 = vsel %vm222_vm1, %v1023_v49, %v1026_v10 }
 0xc33   :  { %1029 = vst [vmem:[%s2250_s5] sm:$0xff] %v1028_v14  ;;  %s1339_s5 = sshll.u32 %s1820_s3, 4  ;;  %s1340_s5 = int_to_ptr.vmem [resolvable:$true] %s1339_s5 }
 0xc34   :  { %s1794_s19 = scalar_lea.vmem %s1340_s5, 1024  ;;  %p1799_p1 = scmp.lt.s32.totalorder %s1340_s5, %s1340_s5 }
 0xc35   :  { %p1795_p0 = scmp.ne.s32.totalorder %s1340_s5, %s1794_s19  ;;  %p1800_p2 = scmp.lt.s32.totalorder %s1794_s19, %s1794_s19 }
 0xc37   :  { %p1801_p3 = por %p1800_p2, %p1799_p1 }
 0xc39   :  { %p1802_p4 = pnand %p1801_p3, %p1795_p0 }
 0xc9f   :  { %v1464_v28 = vpop.f32.mrb[22].mxu1 }
 0xca0   :  { %v1157_v35 = vadd.f32 %v1464_v28, %v1387_v1  ;;  %v1151_v37 = vpop.f32.mrb[23].mxu1 }
 0xca1   :  { %v1152_v40 = vadd.f32 %v1387_v1, %v1151_v37 }
 0xca2   :  { %v1167_v57 = vmax.f32 %v1157_v35, 0.0 }
 0xca3   :  { %v1166_v11 = vmax.f32 %v1152_v40, 0.0  ;;  %v1483_v56 = vpop.f32.mrb[24].mxu1 }
 0xca4   :  { %v1268_v12 = vadd.f32 %v1483_v56, %v1396_v7  ;;  %v1262_v13 = vpop.f32.mrb[25].mxu1 }
 0xca5   :  { %v1263_v17 = vadd.f32 %v1396_v7, %v1262_v13  ;;  %1490 = vmatprep.mubr.msk.f32.mxu1 %vm222_vm1, %v1166_v11 }
 0xca6   :  { %vm1302_vm2 = vcmp.gt.f32.partialorder %v1268_v12, 0.0  ;;  %v1310_v19 = vmul.f32 0.01, %v1268_v12  ;;  %1491 = vmatmul.mubr.msk.f32.gmra.mrb[30].mxu1 %vm222_vm1, %v1167_v57 }
 0xca7   :  { %vm1301_vm4 = vcmp.gt.f32.partialorder %v1263_v17, 0.0  ;;  %v1309_v23 = vmul.f32 0.01, %v1263_v17  ;;  %v1486_v24 = vpop.f32.mrb[26].mxu1 }
 0xca8   :  { %v1318_v25 = vsel %vm1302_vm2, %v1268_v12, %v1310_v19  ;;  %v1278_v26 = vadd.f32 %v1486_v24, %v1396_v7  ;;  %v1272_v27 = vpop.f32.mrb[27].mxu1 }
 0xca9   :  { %1327 = vst.msk [vmem:[#allocation3 + $0x8] sm:$0xff] %vm1325_vm3, %v1318_v25  ;;  %v1317_v46 = vsel %vm1301_vm4, %v1263_v17, %v1309_v23  ;;  %v1273_v50 = vadd.f32 %v1396_v7, %v1272_v27 }
 0xcaa   :  { %1326 = vst.msk [vmem:[#allocation3] sm:$0xff] %vm1325_vm3, %v1317_v46  ;;  %vm1304_vm5 = vcmp.gt.f32.partialorder %v1278_v26, 0.0  ;;  %v1312_v51 = vmul.f32 0.01, %v1278_v26 }
 0xcab   :  { %vm1303_vm6 = vcmp.gt.f32.partialorder %v1273_v50, 0.0  ;;  %v1311_v47 = vmul.f32 0.01, %v1273_v50  ;;  %v1489_v29 = vpop.f32.mrb[28].mxu1 }
 0xcac   :  { %v1320_v31 = vsel %vm1304_vm5, %v1278_v26, %v1312_v51  ;;  %v1288_v32 = vadd.f32 %v1489_v29, %v1396_v7  ;;  %v1282_v33 = vpop.f32.mrb[29].mxu1 }
 0xcad   :  { %1329 = vst.msk [vmem:[#allocation3 + $0x18] sm:$0xff] %vm1325_vm3, %v1320_v31  ;;  %v1319_v34 = vsel %vm1303_vm6, %v1273_v50, %v1311_v47  ;;  %v1283_v60 = vadd.f32 %v1396_v7, %v1282_v33 }
 0xcae   :  { %1328 = vst.msk [vmem:[#allocation3 + $0x10] sm:$0xff] %vm1325_vm3, %v1319_v34  ;;  %vm1306_vm7 = vcmp.gt.f32.partialorder %v1288_v32, 0.0  ;;  %v1314_v62 = vmul.f32 0.01, %v1288_v32 }
 0xcaf   :  { %vm1305_vm8 = vcmp.gt.f32.partialorder %v1283_v60, 0.0  ;;  %v1313_v61 = vmul.f32 0.01, %v1283_v60 }
 0xcb0   :  { %v1322_v4 = vsel %vm1306_vm7, %v1288_v32, %v1314_v62 }
 0xcb1   :  { %1331 = vst.msk [vmem:[#allocation3 + $0x28] sm:$0xff] %vm1325_vm3, %v1322_v4  ;;  %v1321_v36 = vsel %vm1305_vm8, %v1283_v60, %v1313_v61 }
 0xcb2   :  { %1330 = vst.msk [vmem:[#allocation3 + $0x20] sm:$0xff] %vm1325_vm3, %v1321_v36 }
 0xd79   :  { %v1492_v38 = vpop.f32.mrb[30].mxu1 }
 0xd7a   :  { %v1298_v39 = vadd.f32 %v1492_v38, %v1396_v7  ;;  %v1292_v41 = vpop.f32.mrb[31].mxu1 }
 0xd7b   :  { %v1293_v42 = vadd.f32 %v1396_v7, %v1292_v41 }
 0xd7c   :  { %vm1308_vm9 = vcmp.gt.f32.partialorder %v1298_v39, 0.0  ;;  %v1316_v43 = vmul.f32 0.01, %v1298_v39 }
 0xd7d   :  { %vm1307_vm10 = vcmp.gt.f32.partialorder %v1293_v42, 0.0  ;;  %v1315_v44 = vmul.f32 0.01, %v1293_v42 }
 0xd7e   :  { %v1324_v45 = vsel %vm1308_vm9, %v1298_v39, %v1316_v43 }
 0xd7f   :  { %1333 = vst.msk [vmem:[#allocation3 + $0x38] sm:$0xff] %vm1325_vm3, %v1324_v45  ;;  %v1323_v52 = vsel %vm1307_vm10, %v1293_v42, %v1315_v44 }
 0xd80   :  { %1332 = vst.msk [vmem:[#allocation3 + $0x30] sm:$0xff] %vm1325_vm3, %v1323_v52 }
 0xd81   :  { %1805 = shalt.err (!%p1802_p4)
}
 0xd82   :  { %s1806_s22 = scalar_lea.hbm %s2249_s4, 1024 }
 0xd83   :  { %p1807_p5 = scmp.ne.s32.totalorder %s2249_s4, %s1806_s22  ;;  %p1810_p6 = scmp.lt.u32.totalorder %s1806_s22, %s2249_s4 }
 0xd85   :  { %p1812_p7 = pnand %p1810_p6, %p1807_p5 }
 0xd87   :  { %1815 = shalt.err (!%p1812_p7)
}
 0xd88   :  { %s1821_s27 = smov 128   ;;  %s1822_s28 = smov 8  }
 0xd89   :  { %1345 = dma.vmem_to_hbm [thread:$0]  %s1340_s5, 1024, %s2249_s4, [#allocation4], %s1821_s27, %s1821_s27, %s1822_s28  }
 0xd8a   :  { %1816 = dma.done.wait [#allocation4], 1024  }
 0xd8b   :  { %1817 = vsyncadd [#allocation4], 4294966272 }
 0xd8c   :  { %1353 = vsyncpa [#allocation4], 1 }

</bundles_post_ra>
